<compile_context>
chip_gen: v7x
topology: tpu7x:2x2x1
jax: 0.10.0
libtpu: 0.0.40
codegen_flags: <defaults>
</compile_context>

<pallas_src>
import functools

import jax
import jax.numpy as jnp
from jax.experimental import pallas as pl
from jax.experimental.pallas import tpu as pltpu

LANES = 128
SUBLANES = 8
# (4096, 128) f32 tile = 2 MiB; 2 inputs x 2 pipeline buffers = 8 MiB, within
# the default scoped VMEM on every generation (v5e 16 MiB, v6e/v7x 32 MiB).
MAX_BLOCK_ROWS = 4096


def _round_up(x, m):
    return (x + m - 1) // m * m


def _focal_kernel(x_ref, t_ref, out_ref, *, alpha, gamma, block_rows,
                  valid_rows_last, need_mask):
    x = x_ref[...].astype(jnp.float32)
    t = t_ref[...].astype(jnp.float32)

    # One shared exponential e = exp(-|x|) feeds both the BCE log1p and the
    # sigmoid (saves a second EUP exp).
    e = jnp.exp(-jnp.abs(x))
    # Numerically-stable BCE-with-logits (== F.binary_cross_entropy_with_logits):
    #   ce = max(x, 0) - x*t + log1p(exp(-|x|))
    ce = jnp.maximum(x, 0.0) - x * t + jnp.log1p(e)
    # Approx reciprocal runs in the EUP slot instead of VALU Newton refinement.
    inv = pl.reciprocal(1.0 + e, approx=True)
    p = jnp.where(x >= 0.0, inv, e * inv)

    # FMA-friendly: 1 - p_t == p + t - 2*p*t  (skip materializing p_t).
    one_minus_pt = p + t - 2.0 * (p * t)

    # gamma is a static Python float: small integer exponents become repeated
    # multiplies (float ** lowers to exp(gamma*log(.)) = 2 extra EUP ops).
    g = float(gamma)
    if g.is_integer() and 0 <= int(g) <= 4:
        gi = int(g)
        focal = jnp.ones_like(one_minus_pt) if gi == 0 else one_minus_pt
        for _ in range(max(gi - 1, 0)):
            focal = focal * one_minus_pt
    else:
        # Clamp guards against tiny negatives from the approx reciprocal.
        focal = jnp.maximum(one_minus_pt, 0.0) ** g

    loss = ce * focal
    if alpha >= 0:
        # alpha_t = alpha*t + (1-alpha)*(1-t) = (1-alpha) + (2*alpha-1)*t.
        loss = ((1.0 - alpha) + (2.0 * alpha - 1.0) * t) * loss

    def _partial(v):
        # Per-block partial sum over sublane groups (pure VPU vreg adds, no
        # cross-lane XLU reduce, no SMEM scalar RMW). For big blocks, split
        # into 4 independent accumulator chains so the adds interleave with
        # loss production instead of forming one long dependent vadd chain.
        if block_rows % (SUBLANES * 4) == 0:
            r = v.reshape(block_rows // (SUBLANES * 4), 4, SUBLANES, LANES)
            return jnp.sum(jnp.sum(r, axis=0), axis=0)
        return jnp.sum(v.reshape(block_rows // SUBLANES, SUBLANES, LANES),
                       axis=0)

    if need_mask:
        last = pl.num_programs(0) - 1

        @pl.when(pl.program_id(0) != last)
        def _():
            out_ref[...] = _partial(loss)

        @pl.when(pl.program_id(0) == last)
        def _():
            # Only the final block pays the iota/compare/select. The select
            # (lane-wise) blocks NaN/Inf from the Pallas-padded tail rows.
            row_ids = jax.lax.broadcasted_iota(jnp.int32,
                                               (block_rows, LANES), 0)
            masked = jnp.where(row_ids < valid_rows_last, loss, 0.0)
            out_ref[...] = _partial(masked)
    else:
        out_ref[...] = _partial(loss)


def _focal_sum_tail(x, t, alpha, gamma):
    # Pure-XLA focal loss sum for a <128-element ragged tail (avoids the
    # full-array jnp.pad HBM copy that an aligned kernel launch would need).
    x = x.astype(jnp.float32)
    t = t.astype(jnp.float32)
    ce = jnp.maximum(x, 0.0) - x * t + jnp.log1p(jnp.exp(-jnp.abs(x)))
    p = jax.nn.sigmoid(x)
    one_minus_pt = p + t - 2.0 * p * t
    loss = ce * one_minus_pt ** gamma
    if alpha >= 0:
        loss = (alpha * t + (1.0 - alpha) * (1.0 - t)) * loss
    return jnp.sum(loss)


def focal_loss(classifications, targets, alpha=0.5, gamma=2.0, reduce="mean"):
    if reduce not in ("mean", "sum"):
        raise ValueError("reduce type is wrong!")

    # Keep the source dtype (bf16 halves HBM read bytes); the kernel upcasts
    # to f32 internally (required anyway on v5e's f32-only VPU/EUP).
    x = jnp.reshape(classifications, (-1,))
    t = jnp.reshape(targets, (-1,))
    n = x.shape[0]

    rows = n // LANES
    n_main = rows * LANES

    tail_sum = None
    if n_main != n:
        tail_sum = _focal_sum_tail(x[n_main:], t[n_main:], float(alpha),
                                   float(gamma))

    if rows == 0:
        total = tail_sum
    else:
        # Contiguous slice + reshape: metadata only, no HBM copy.
        x2 = x[:n_main].reshape(rows, LANES)
        t2 = t[:n_main].reshape(rows, LANES)

        # Row alignment: 8 for 32-bit dtypes, 16 for bf16, 32 for int8 (packed
        # sublane tiles), so narrow inputs don't force a relayout.
        itemsize = min(jnp.dtype(x2.dtype).itemsize,
                       jnp.dtype(t2.dtype).itemsize)
        row_align = SUBLANES * max(1, 4 // max(itemsize, 1))

        # Aim for >=2 grid blocks (v7x: shard the parallel axis across both
        # TensorCores) while capping the tile at MAX_BLOCK_ROWS.
        block_rows = min(MAX_BLOCK_ROWS,
                         max(row_align, _round_up(pl.cdiv(rows, 2), row_align)))
        num_blocks = pl.cdiv(rows, block_rows)
        valid_rows_last = rows - (num_blocks - 1) * block_rows
        need_mask = valid_rows_last != block_rows

        kernel = functools.partial(
            _focal_kernel,
            alpha=float(alpha),
            gamma=float(gamma),
            block_rows=block_rows,
            valid_rows_last=valid_rows_last,
            need_mask=need_mask,
        )

        partials = pl.pallas_call(
            kernel,
            out_shape=jax.ShapeDtypeStruct((num_blocks * SUBLANES, LANES),
                                           jnp.float32),
            grid_spec=pltpu.PrefetchScalarGridSpec(
                num_scalar_prefetch=0,
                grid=(num_blocks,),
                in_specs=[
                    pl.BlockSpec((block_rows, LANES), lambda i: (i, 0)),
                    pl.BlockSpec((block_rows, LANES), lambda i: (i, 0)),
                ],
                out_specs=pl.BlockSpec((SUBLANES, LANES), lambda i: (i, 0)),
            ),
            # Fully parallel grid (each block writes its own lane-dense
            # (8,128) partial): Mosaic may shard row-blocks across both
            # TensorCores on v7x; harmless on v5e/v6e.
            compiler_params=pltpu.CompilerParams(
                dimension_semantics=("parallel",),
            ),
        )(x2, t2)

        total = jnp.sum(partials)
        if tail_sum is not None:
            total = total + tail_sum

    if reduce == "mean":
        return total / jnp.float32(n)
    return total


if __name__ == "__main__":
    key = jax.random.PRNGKey(0)
    k1, k2, k3, k4, k5, k6 = jax.random.split(key, 6)

    def _ref(xa, ta, alpha, gamma, reduce):
        xf = xa.reshape(-1).astype(jnp.float32)
        tf = ta.reshape(-1).astype(jnp.float32)
        ce = jnp.maximum(xf, 0.0) - xf * tf + jnp.log1p(jnp.exp(-jnp.abs(xf)))
        p = jax.nn.sigmoid(xf)
        p_t = p * tf + (1.0 - p) * (1.0 - tf)
        loss = ce * (1.0 - p_t) ** gamma
        if alpha >= 0:
            loss = (alpha * tf + (1.0 - alpha) * (1.0 - tf)) * loss
        return loss.mean() if reduce == "mean" else loss.sum()

    # Case 1: NCHW logits / binary targets (lane-aligned count, 2 blocks).
    x = jax.random.normal(k1, (2, 4, 16, 16), dtype=jnp.float32)
    tgt = (jax.random.uniform(k2, (2, 4, 16, 16)) > 0.5).astype(jnp.float32)
    out = focal_loss(x, tgt, alpha=0.5, gamma=2.0, reduce="mean")
    jax.block_until_ready(out)
    ref = _ref(x, tgt, 0.5, 2.0, "mean")
    assert jnp.allclose(out, ref, rtol=2e-3, atol=1e-6), (out, ref)

    # Case 2: ragged element count (exercises wrapper tail + masked last
    # block), 'sum' reduction.
    x2 = jax.random.normal(k3, (2, 3, 17, 13), dtype=jnp.float32)
    t2 = (jax.random.uniform(k4, (2, 3, 17, 13)) > 0.3).astype(jnp.float32)
    out2 = focal_loss(x2, t2, alpha=0.25, gamma=2.0, reduce="sum")
    jax.block_until_ready(out2)
    ref2 = _ref(x2, t2, 0.25, 2.0, "sum")
    assert jnp.allclose(out2, ref2, rtol=2e-3, atol=1e-4), (out2, ref2)

    # Case 3: larger input — exercises the big-tile / two-level partial-sum
    # path (block_rows = 2048, no mask).
    x3 = jax.random.normal(k5, (4, 8, 128, 128), dtype=jnp.float32)
    t3 = (jax.random.uniform(k6, (4, 8, 128, 128)) > 0.5).astype(jnp.float32)
    out3 = focal_loss(x3, t3, alpha=0.5, gamma=2.0, reduce="mean")
    jax.block_until_ready(out3)
    ref3 = _ref(x3, t3, 0.5, 2.0, "mean")
    assert jnp.allclose(out3, ref3, rtol=2e-3, atol=1e-6), (out3, ref3)

    print("KERNEL_OK")
</pallas_src>

<mosaic_0001>
module attributes {stable_mosaic.version = 11 : i64} {
  func.func @_focal_kernel(%arg0: i32, %arg1: memref<8x128xf32, #tpu.memory_space<vmem>>, %arg2: memref<8x128xf32, #tpu.memory_space<vmem>>, %arg3: memref<8x128xf32, #tpu.memory_space<vmem>>) attributes {dimension_semantics = [#tpu.dimension_semantics<parallel>], iteration_bounds = array<i64: 2>, scalar_prefetch = 0 : i64, scratch_operands = 0 : i64, tpu.core_type = #tpu.core_type<tc>, window_params = [{transform_indices = @transform_0, window_bounds = array<i64: 8, 128>}, {transform_indices = @transform_1, window_bounds = array<i64: 8, 128>}, {transform_indices = @transform_2, window_bounds = array<i64: 8, 128>}]} {
    %c0 = arith.constant 0 : index
    %c0_0 = arith.constant 0 : index
    %0 = vector.load %arg1[%c0, %c0_0] : memref<8x128xf32, #tpu.memory_space<vmem>>, vector<8x128xf32>
    %c0_1 = arith.constant 0 : index
    %c0_2 = arith.constant 0 : index
    %1 = vector.load %arg2[%c0_1, %c0_2] : memref<8x128xf32, #tpu.memory_space<vmem>>, vector<8x128xf32>
    %2 = math.absf %0 : vector<8x128xf32>
    %cst = arith.constant 0.000000e+00 : f32
    %3 = vector.broadcast %cst : f32 to vector<8x128xf32>
    %4 = arith.subf %3, %2 : vector<8x128xf32>
    %5 = math.exp %4 : vector<8x128xf32>
    %cst_3 = arith.constant 0.000000e+00 : f32
    %6 = vector.broadcast %cst_3 : f32 to vector<8x128xf32>
    %7 = arith.maximumf %0, %6 : vector<8x128xf32>
    %8 = arith.mulf %0, %1 : vector<8x128xf32>
    %9 = arith.subf %7, %8 : vector<8x128xf32>
    %10 = math.log1p %5 : vector<8x128xf32>
    %11 = arith.addf %9, %10 : vector<8x128xf32>
    %cst_4 = arith.constant 1.000000e+00 : f32
    %12 = vector.broadcast %cst_4 : f32 to vector<8x128xf32>
    %13 = arith.addf %12, %5 : vector<8x128xf32>
    %14 = tpu.reciprocal %13 {approx = true} : vector<8x128xf32> -> vector<8x128xf32>
    %cst_5 = arith.constant 0.000000e+00 : f32
    %15 = vector.broadcast %cst_5 : f32 to vector<8x128xf32>
    %16 = arith.cmpf oge, %0, %15 : vector<8x128xf32>
    %17 = arith.mulf %5, %14 : vector<8x128xf32>
    %18 = arith.select %16, %14, %17 : vector<8x128xi1>, vector<8x128xf32>
    %19 = arith.addf %18, %1 : vector<8x128xf32>
    %20 = arith.mulf %18, %1 : vector<8x128xf32>
    %cst_6 = arith.constant 2.000000e+00 : f32
    %21 = vector.broadcast %cst_6 : f32 to vector<8x128xf32>
    %22 = arith.mulf %21, %20 : vector<8x128xf32>
    %23 = arith.subf %19, %22 : vector<8x128xf32>
    %24 = arith.mulf %23, %23 : vector<8x128xf32>
    %25 = arith.mulf %11, %24 : vector<8x128xf32>
    %cst_7 = arith.constant 0.000000e+00 : f32
    %26 = vector.broadcast %cst_7 : f32 to vector<8x128xf32>
    %27 = arith.mulf %26, %1 : vector<8x128xf32>
    %cst_8 = arith.constant 5.000000e-01 : f32
    %28 = vector.broadcast %cst_8 : f32 to vector<8x128xf32>
    %29 = arith.addf %28, %27 : vector<8x128xf32>
    %30 = arith.mulf %29, %25 : vector<8x128xf32>
    %31 = vector.shape_cast %30 : vector<8x128xf32> to vector<1x8x128xf32>
    %cst_9 = arith.constant dense<0.000000e+00> : vector<8x128xf32>
    %32 = vector.multi_reduction <add>, %31, %cst_9 [0] : vector<1x8x128xf32> to vector<8x128xf32>
    %c0_10 = arith.constant 0 : index
    %c0_11 = arith.constant 0 : index
    %33 = vector.load %arg3[%c0_10, %c0_11] : memref<8x128xf32, #tpu.memory_space<vmem>>, vector<8x128xf32>
    tpu.vector_store %arg3[%c0_10, %c0_11], %32 {strides = array<i32>} : memref<8x128xf32, #tpu.memory_space<vmem>>, vector<8x128xf32>,
    return
  }
  func.func @transform_0(%arg0: i32) -> (i32, i32) {
    %c0_i32 = arith.constant 0 : i32
    %c0_i32_0 = arith.constant 0 : i32
    return %arg0, %c0_i32 : i32, i32
  }
  func.func @transform_1(%arg0: i32) -> (i32, i32) {
    %c0_i32 = arith.constant 0 : i32
    %c0_i32_0 = arith.constant 0 : i32
    return %arg0, %c0_i32 : i32, i32
  }
  func.func @transform_2(%arg0: i32) -> (i32, i32) {
    %c0_i32 = arith.constant 0 : i32
    %c0_i32_0 = arith.constant 0 : i32
    return %arg0, %c0_i32 : i32, i32
  }
}

</mosaic_0001>

<bundles_post_ra>
// kernel: tpu_custom_call.1
= control target key start
LH: loop header
LB: loop body
LE: loop exit
PB: predicated region body
PF: predicated region fallthrough
CT: control target
= control target key end

     0   :  { %7 = vsyncpa [#allocation3], 0  ;;  %s774_s0 = inlined_call_operand.hbm [shape: f32[16,128], index: 0, kind: input, shape index: {}]   ;;  %s775_s1 = inlined_call_operand.hbm [shape: f32[16,128], index: 1, kind: input, shape index: {}]   ;;  %s776_s2 = inlined_call_operand.hbm [shape: f32[16,128], index: 2, kind: output, shape index: {}]  }
   0x1   :  { %9 = vsyncpa [#allocation3 + $0x1], 0 }
   0x2   :  { %10 = vsyncpa [#allocation6], 0 }
   0x3   :  { %12 = vsyncpa [#allocation6 + $0x1], 0 }
   0x4   :  { %13 = vsyncpa [#allocation4], 0 }
   0x5   :  { %15 = vsyncpa [#allocation4 + $0x1], 0  ;;  %s560_s9 = smov 0   ;;  %s562_s10 = smov 0  }
   0x6   :  { %s564_s11 = smov 0   ;;  %s566_s12 = smov 0  }
   0x7 LB: > { %s581_s13 = sadd.s32 4294967295, %s540_s12   ;;  %s338_s14 = sadd.s32 4294967294, %s540_s12   ;;  %s540_s12 = sphi %s566_s12, %s795_s12   ;;  %s536_s11 = sphi %s564_s11, %s794_s11   ;;  %s532_s10 = sphi %s562_s10, %s793_s10   ;;  %s528_s9 = sphi %s560_s9, %s792_s9  }
   0x8   : > { %s585_s15 = sadd.s32 1, %s540_s12   ;;  %s28_s16 = sadd.s32 1, %s536_s11 }
   0x9   : > { %s25_s17 = ssub.s32 %s540_s12, %s585_s15  ;;  %p35_p0 = scmp.ne.s32.totalorder %s536_s11, %s532_s10 }
   0xa   : > { %p26_p1 = scmp.eq.s32.totalorder %s25_s17, 0  ;;  %p36_p2 = scmp.eq.s32.totalorder %s540_s12, 0 }
   0xb   : > { %p41_p3 = scmp.ne.s32.totalorder %s532_s10, %s528_s9  ;;  %p42_p4 = scmp.eq.s32.totalorder %s581_s13, 0 }
   0xc   : > { %s597_s18 = scalar_select %p26_p1, %s536_s11, %s28_s16  }
   0xd   : > { %p599_p5 = por %p36_p2, %p35_p0  ;;  %p603_p6 = por %p42_p4, %p41_p3 }
   0xe   : > { %p91_p7 = scmp.eq.s32.totalorder %s581_s13, 1  ;;  %p97_p8 = scmp.eq.s32.totalorder %s338_s14, 1 }
   0xf   : > { %s780_s20 = scalar_select %p603_p6, 1, 0 }
  0x10   : > { %p370_p10 = scmp.lt.s32.totalorder %s540_s12, 2  ;;  %p610_p11 = por %p91_p7, %p35_p0 }
  0x11   : > { %p614_p12 = por %p97_p8, %p41_p3  ;;  %s619_s23 = sand.u32 1, %s536_s11  }
  0x12   : > { %s781_s21 = scalar_select %p610_p11, 1, 0 }
  0x13   : > { %s782_s22 = scalar_select %p614_p12, 1, 0 }
  0x14   : > { %s342_s24 = sshll.u32 %s540_s12, 7  ;;  %s341_s25 = sshll.u32 %s619_s23, 3 }
  0x15   : > { %s628_s28 = scalar_lea.hbm %s774_s0, %s342_s24  ;;  %s121_s29 = scalar_lea.vmem [#allocation2], %s341_s25 }
  0x16   : > { %s128_s30 = sshll.u32 %s121_s29, 4  ;;  %p634_p13 = pnand %p370_p10, %p599_p5  ;;  %s638_s30 = int_to_ptr.vmem [resolvable:$true] %s128_s30 }
  0x17   : > { %s118_s4 = scalar_lea.sflag [#allocation3], %s619_s23  ;;  %s410_s5 = scalar_lea.hbm %s628_s28, 128 }
  0x18   : > { %p411_p2 = scmp.ne.s32.totalorder %s628_s28, %s410_s5  ;;  %p412_p3 = pneg %p634_p13 }
  0x19   : > { %s415_s8 = scalar_lea.hbm %s774_s0, 256  ;;  %p416_p5 = scmp.lt.u32.totalorder %s628_s28, %s774_s0 }
  0x1a   : > { %p413_p4 = pnand %p412_p3, %p411_p2  ;;  %p417_p8 = scmp.lt.u32.totalorder %s415_s8, %s410_s5 }
  0x1b   : > { %p419_p9 = scmp.lt.u32.totalorder %s410_s5, %s628_s28 }
  0x1c   : > { %p414_p7 = pneg %p413_p4  ;;  %p418_p10 = por %p417_p8, %p416_p5 }
  0x1e   : > { %p420_p0 = por %p419_p9, %p418_p10 }
  0x20   : > { %p421_p1 = pnand %p420_p0, %p414_p7 }
  0x22   : > { %424 = shalt.err (!%p421_p1)
}
  0x23   : > { %s425_s17 = scalar_lea.vmem %s638_s30, 128  ;;  %s542_s19 = smov [#allocation2]  }
  0x24   : > { %p426_p2 = scmp.ne.s32.totalorder %s638_s30, %s425_s17  ;;  %s430_s26 = sshll.u32 %s542_s19, 4  ;;  %s431_s26 = int_to_ptr.vmem [resolvable:$false] %s430_s26 }
  0x25   : > { %s432_s27 = scalar_lea.vmem %s431_s26, 256  ;;  %p433_p11 = scmp.lt.s32.totalorder %s638_s30, %s431_s26 }
  0x26   : > { %p428_p4 = pnand %p426_p2, %p412_p3  ;;  %p434_p5 = scmp.lt.s32.totalorder %s432_s27, %s425_s17 }
  0x28   : > { %p429_p12 = pneg %p428_p4  ;;  %p435_p8 = por %p434_p5, %p433_p11 }
  0x2a   : > { %p436_p9 = pnand %p435_p8, %p429_p12 }
  0x2c   : > { %439 = shalt.err (!%p436_p9)
}
  0x2d   : > { %362 = dma.hbm_to_vmem [thread:$0]  (!%p634_p13), %s628_s28, 128, %s638_s30, %s118_s4  }
  0x2e   : > { %p784_p0 = scmp.lt.s32.totalorder %s540_s12, 3  ;;  %p785_p1 = scmp.ge.s32.totalorder %s540_s12, 1 }
  0x2f   : > { %s681_s7 = scalar_lea.hbm %s775_s1, %s342_s24  ;;  %s139_s8 = scalar_lea.vmem [#allocation5], %s341_s25 }
  0x30   : > { %p672_p7 = pnand %p785_p1, %p784_p0  ;;  %s146_s14 = sshll.u32 %s139_s8, 4  ;;  %s147_s14 = int_to_ptr.vmem [resolvable:$true] %s146_s14 }
  0x31   : > { %s136_s28 = scalar_lea.sflag [#allocation6], %s619_s23  ;;  %s440_s30 = scalar_lea.hbm %s681_s7, 128 }
  0x32   : > { %s786_s29 = scalar_select %p672_p7, 1, 0 }
  0x33   : > { %p441_p11 = scmp.ne.s32.totalorder %s681_s7, %s440_s30  ;;  %s445_s24 = scalar_lea.hbm %s775_s1, 256 }
  0x34   : > { %p446_p2 = scmp.lt.u32.totalorder %s681_s7, %s775_s1  ;;  %p447_p4 = scmp.lt.u32.totalorder %s445_s24, %s440_s30 }
  0x35   : > { %p443_p12 = pnand %p441_p11, %p412_p3  ;;  %p449_p8 = scmp.lt.u32.totalorder %s440_s30, %s681_s7 }
  0x36   : > { %p448_p5 = por %p447_p4, %p446_p2 }
  0x37   : > { %p444_p10 = pneg %p443_p12 }
  0x38   : > { %p450_p9 = por %p449_p8, %p448_p5 }
  0x3a   : > { %p451_p0 = pnand %p450_p9, %p444_p10 }
  0x3c   : > { %454 = shalt.err (!%p451_p0)
}
  0x3d   : > { %s455_s23 = scalar_lea.vmem %s147_s14, 128  ;;  %s543_s25 = smov [#allocation5]  }
  0x3e   : > { %p456_p1 = scmp.ne.s32.totalorder %s147_s14, %s455_s23  ;;  %s460_s26 = sshll.u32 %s543_s25, 4  ;;  %s461_s26 = int_to_ptr.vmem [resolvable:$false] %s460_s26 }
  0x3f   : > { %s462_s27 = scalar_lea.vmem %s461_s26, 256  ;;  %p463_p6 = scmp.lt.s32.totalorder %s147_s14, %s461_s26 }
  0x40   : > { %p458_p11 = pnand %p456_p1, %p412_p3  ;;  %p464_p7 = scmp.lt.s32.totalorder %s462_s27, %s455_s23 }
  0x42   : > { %p459_p12 = pneg %p458_p11  ;;  %p465_p2 = por %p464_p7, %p463_p6 }
  0x44   : > { %p466_p4 = pnand %p465_p2, %p459_p12 }
  0x46   : > { %469 = shalt.err (!%p466_p4)
}
  0x47   : > { %365 = dma.hbm_to_vmem [thread:$0]  (!%p634_p13), %s681_s7, 128, %s147_s14, %s136_s28  }
  0x48   : > { %p787_p10 = scmp.ne.s32.totalorder %s786_s29, 0 }
  0x49   : > { %s708_s5 = sand.u32 (!%p787_p10), 1, %s532_s10   ;;  %p788_p6 = scmp.ne.s32.totalorder (!%p787_p10), %s780_s20, 0 }
  0x4a   : > { %155 = sbr.rel (%p787_p10) target bundleno = 145 (0x91), region = 28  ;;  %s711_s6 = sshll.u32 (!%p787_p10), %s708_s5, 3 }
  0x4b   : > { %s158_s8 = scalar_lea.sflag (!%p787_p10), [#allocation3], %s708_s5  ;;  %s161_s30 = scalar_lea.vmem (!%p787_p10), [#allocation2], %s711_s6 }
  0x51   : > { %515 = dma.done.wait (%p788_p6), %s158_s8, 128  }
  0x52   : > { %517 = vsyncadd (%p788_p6), %s158_s8, 4294967168  ;;  %s167_s3 = scalar_lea.sflag [#allocation6], %s708_s5  ;;  %s170_s29 = scalar_lea.vmem [#allocation5], %s711_s6 }
  0x53   : > { %519 = dma.done.wait (%p788_p6), %s167_s3, 128  }
  0x54   : > { %521 = vsyncadd (%p788_p6), %s167_s3, 4294967168  ;;  %v196_v0 = vld [vmem:[%s161_s30] sm:$0xff]  ;;  %v197_v10 = vld [vmem:[%s170_s29] sm:$0xff]  ;;  %s195_s20 = scalar_lea.vmem [#allocation7], %s711_s6  ;;  %s350_s14 = sshll.u32 %s581_s13, 7 }
  0x55   : > { %v198_v1 = vand.u32 2147483647, %v196_v0  ;;  %v202_v12 = vmax.f32 %v196_v0, 0.0  ;;  %v203_v13 = vmul.f32 %v197_v10, %v196_v0  ;;  %vm217_vm0 = vcmp.ge.f32.partialorder %v196_v0, 0.0  ;;  %s245_s7 = sshll.u32 %s195_s20, 4  ;;  %s732_s16 = scalar_lea.hbm %s776_s2, %s350_s14  ;;  %s727_s7 = int_to_ptr.vmem [resolvable:$true] %s245_s7 }
  0x56   : > { %v226_v23 = vmul.f32 0.0, %v197_v10  ;;  %s232_s24 = scalar_lea.sflag [#allocation4], %s708_s5  ;;  %s470_s17 = scalar_lea.vmem %s727_s7, 128 }
  0x57   : > { %v199_v2 = vsub.f32 0.0, %v198_v1  ;;  %v204_v18 = vsub.f32 %v202_v12, %v203_v13  ;;  %p471_p13 = scmp.ne.s32.totalorder %s727_s7, %s470_s17  ;;  %p789_p3 = scmp.ne.s32.totalorder %s781_s21, 0 }
  0x58   : > { %v227_v27 = vadd.f32 0.5, %v226_v23  ;;  %s544_s13 = smov [#allocation7]  }
  0x59   : > { %v200_v3 = vmul.f32 1.442695, %v199_v2  ;;  %p472_p7 = pnand %p471_p13, %p789_p3  ;;  %s474_s19 = sshll.u32 %s544_s13, 4  ;;  %s475_s19 = int_to_ptr.vmem [resolvable:$false] %s474_s19 }
  0x5a   : > { %s476_s23 = scalar_lea.vmem %s475_s19, 256  ;;  %p477_p8 = scmp.lt.s32.totalorder %s727_s7, %s475_s19 }
  0x5b   : > { %404 = vpow2.f32 %v200_v3  ;;  %p473_p5 = pneg %p472_p7  ;;  %p478_p9 = scmp.lt.s32.totalorder %s476_s23, %s470_s17 }
  0x5d   : > { %p479_p0 = por %p478_p9, %p477_p8 }
  0x5f   : > { %p480_p1 = pnand %p479_p0, %p473_p5 }
  0x65   : > { %v405_v4 = vpop.eup %404 }
  0x66   : > { %v205_v5 = vadd.f32 1.0, %v405_v4  ;;  %v208_v6 = vmul.f32 -0.5, %v405_v4  ;;  %v211_v8 = vand.u32 2147483647, %v405_v4 }
  0x68   : > { %406 = vlog2.f32 %v205_v5  ;;  %v209_v7 = vadd.f32 1.0, %v208_v6  ;;  %vm212_vm1 = vcmp.lt.f32.partialorder %v211_v8, 0.0004427343 }
  0x69   : > { %408 = vrcp.f32 %v205_v5 }
  0x6a   : > { %v210_v15 = vmul.f32 %v405_v4, %v209_v7 }
  0x72   : > { %v407_v9 = vpop.eup %406 }
  0x73   : > { %v409_v11 = vpop.eup %408  ;;  %v207_v14 = vmul.f32 0.6931472, %v407_v9 }
  0x74   : > { %v218_v16 = vmul.f32 %v409_v11, %v405_v4 }
  0x75   : > { %v213_v21 = vsel %vm212_vm1, %v210_v15, %v207_v14 }
  0x76   : > { %v219_v17 = vsel %vm217_vm0, %v409_v11, %v218_v16  ;;  %v214_v24 = vadd.f32 %v213_v21, %v204_v18 }
  0x77   : > { %v220_v19 = vadd.f32 %v219_v17, %v197_v10  ;;  %v221_v20 = vmul.f32 %v219_v17, %v197_v10 }
  0x79   : > { %v222_v22 = vmul.f32 2.0, %v221_v20 }
  0x7b   : > { %v223_v25 = vsub.f32 %v220_v19, %v222_v22 }
  0x7d   : > { %v224_v26 = vmul.f32 %v223_v25, %v223_v25 }
  0x7f   : > { %v225_v28 = vmul.f32 %v224_v26, %v214_v24 }
  0x81   : > { %v228_v29 = vmul.f32 %v227_v27, %v225_v28 }
  0x83   : > { %230 = vst [vmem:[%s195_s20] sm:$0xff] %v228_v29 }
  0x84   : > { %483 = shalt.err (!%p480_p1)
}
  0x85   : > { %s484_s25 = scalar_lea.hbm %s732_s16, 128  ;;  %s488_s5 = scalar_lea.hbm %s776_s2, 256 }
  0x86   : > { %p485_p11 = scmp.ne.s32.totalorder %s732_s16, %s484_s25  ;;  %p489_p4 = scmp.lt.u32.totalorder %s732_s16, %s776_s2 }
  0x87   : > { %p490_p10 = scmp.lt.u32.totalorder %s488_s5, %s484_s25  ;;  %p492_p13 = scmp.lt.u32.totalorder %s484_s25, %s732_s16 }
  0x88   : > { %p486_p12 = pnand %p485_p11, %p789_p3 }
  0x89   : > { %p491_p6 = por %p490_p10, %p489_p4 }
  0x8a   : > { %p487_p2 = pneg %p486_p12 }
  0x8b   : > { %p493_p7 = por %p492_p13, %p491_p6 }
  0x8d   : > { %p494_p5 = pnand %p493_p7, %p487_p2 }
  0x8f   : > { %497 = shalt.err (!%p494_p5)
}
  0x90   : > { %357 = dma.vmem_to_hbm [thread:$0]  (%p789_p3), %s727_s7, 128, %s732_s16, %s232_s24  }
  0x91 PF: > { %s257_s30 = sand.u32 1, %s528_s9   ;;  %p790_p8 = scmp.ne.s32.totalorder %s782_s22, 0 }
  0x92   : > { %p791_p9 = scmp.ge.s32.totalorder %s540_s12, 2  ;;  %s258_s3 = scalar_lea.sflag [#allocation4], %s257_s30 }
  0x94   : > { %p367_p0 = pnand %p791_p9, %p790_p8 }
  0x96   : > { %523 = dma.done.wait (!%p367_p0), %s258_s3, 128  }
  0x97   : > { %525 = vsyncadd (!%p367_p0), %s258_s3, 4294967168  ;;  %p18_p1 = scmp.ge.s32.totalorder %s585_s15, 4   ;;  %s792_s9 = smov %s532_s10 }
  0x98   : > { %s793_s10 = smov %s536_s11  ;;  %s794_s11 = smov %s597_s18 }
  0x99   : > { %s795_s12 = smov %s585_s15  ;;  %20 = sbr.rel (!%p18_p1) target bundleno = 7 (0x7), region = 86 }
  0xa0   :  { %263 = vsyncpa [#allocation3], 1 }
  0xa1   :  { %265 = vsyncpa [#allocation3 + $0x1], 1 }
  0xa2   :  { %266 = vsyncpa [#allocation6], 1 }
  0xa3   :  { %268 = vsyncpa [#allocation6 + $0x1], 1 }
  0xa4   :  { %269 = vsyncpa [#allocation4], 1 }
  0xa5   :  { %271 = vsyncpa [#allocation4 + $0x1], 1 }

</bundles_post_ra>
